<compile_context>
chip_gen: v5e
topology: v5e:2x2
jax: 0.10.0
libtpu: 0.0.40
codegen_flags: <defaults>
</compile_context>

<pallas_src>
import functools

import jax
import jax.numpy as jnp
from jax import lax
from jax.experimental import pallas as pl
from jax.experimental.pallas import tpu as pltpu

_LANE = 128
_SUBLANE = 8


def _round_up(x: int, m: int) -> int:
    return (x + m - 1) // m * m


def _linear_kernel(x_ref, w_ref, b_ref, o_ref):
    # x_ref: (TB, D)   VMEM  activation tile
    # w_ref: (Cp, D)   VMEM  weight in native PyTorch layout (no host transpose)
    # b_ref: (1, Cp)   VMEM  lane-padded bias
    # o_ref: (TB, Cp)  VMEM  lane-dense output tile (Cp % 128 == 0)
    acc = lax.dot_general(
        x_ref[...],
        w_ref[...],
        dimension_numbers=(((1,), (1,)), ((), ())),  # contract D with D (== x @ W.T)
        preferred_element_type=jnp.float32,
    )
    o_ref[...] = (acc + b_ref[...]).astype(o_ref.dtype)


def prepare_params(weight, bias):
    """One-time parameter prep (do at init, not per forward call).

    Pads (C, D) weight / (C,) bias with zero rows up to Cp = round_up(C, 128)
    so the kernel's output last dim is lane-dense.
    """
    C, D = weight.shape
    Cp = _round_up(C, _LANE)
    w_p = jnp.zeros((Cp, D), weight.dtype).at[:C, :].set(weight)
    b_p = jnp.zeros((1, Cp), bias.dtype).at[0, :C].set(bias)
    return w_p, b_p


@functools.partial(jax.jit, static_argnames=("num_classes", "block_batch"))
def softmax_regression_forward(x, w_padded, b_padded, *, num_classes, block_batch=256):
    """x: (B, D) f32, w_padded: (Cp, D) f32, b_padded: (1, Cp) f32 -> (B, num_classes) f32."""
    B, D = x.shape
    Cp = w_padded.shape[0]

    # Batch tiling: TB rows per grid step (multiple of 8). Pad B if needed.
    B_pad = _round_up(B, _SUBLANE)
    if B_pad <= block_batch:
        TB = B_pad
    else:
        TB = block_batch
        B_pad = _round_up(B_pad, TB)
    if B_pad != B:
        x = jnp.zeros((B_pad, D), x.dtype).at[:B, :].set(x)

    grid = (B_pad // TB,)

    out_padded = pl.pallas_call(
        _linear_kernel,
        out_shape=jax.ShapeDtypeStruct((B_pad, Cp), x.dtype),
        grid=grid,
        in_specs=[
            pl.BlockSpec((TB, D), lambda i: (i, 0)),    # activation tile per grid step
            pl.BlockSpec((Cp, D), lambda i: (0, 0)),    # weight resident across grid
            pl.BlockSpec((1, Cp), lambda i: (0, 0)),    # bias resident across grid
        ],
        out_specs=pl.BlockSpec((TB, Cp), lambda i: (i, 0)),
        compiler_params=pltpu.CompilerParams(
            dimension_semantics=("parallel",),  # shardable across TensorCores (v7x)
        ),
    )(x, w_padded, b_padded)

    return out_padded[:B, :num_classes]


def reference_forward(x, weight, bias):
    return x @ weight.T + bias


if __name__ == "__main__":
    input_dim = 28 * 28     # 784
    num_classes = 10
    batch = 8

    key = jax.random.PRNGKey(0)
    kx, kw, kb = jax.random.split(key, 3)

    # Deterministic parameter init (mirrors nn.Linear's uniform(-1/sqrt(D), 1/sqrt(D)))
    bound = 1.0 / jnp.sqrt(jnp.float32(input_dim))
    weight = jax.random.uniform(kw, (num_classes, input_dim), jnp.float32, -bound, bound)
    bias = jax.random.uniform(kb, (num_classes,), jnp.float32, -bound, bound)

    x = jax.random.normal(kx, (batch, input_dim), jnp.float32)

    # One-time lane-dense padding of the parameters (parameter-init-time cost).
    w_p, b_p = prepare_params(weight, bias)

    out = softmax_regression_forward(x, w_p, b_p, num_classes=num_classes)
    out = jax.block_until_ready(out)

    ref = reference_forward(x, weight, bias)
    assert out.shape == (batch, num_classes)
    assert jnp.allclose(out, ref, atol=1e-4, rtol=1e-4)

    print("KERNEL_OK")
</pallas_src>

<mosaic_0001>
module attributes {stable_mosaic.version = 11 : i64} {
  func.func @_linear_kernel(%arg0: i32, %arg1: memref<8x784xf32, #tpu.memory_space<vmem>>, %arg2: memref<128x784xf32, #tpu.memory_space<vmem>>, %arg3: memref<1x128xf32, #tpu.memory_space<vmem>>, %arg4: memref<8x128xf32, #tpu.memory_space<vmem>>) attributes {dimension_semantics = [#tpu.dimension_semantics<parallel>], iteration_bounds = array<i64: 1>, scalar_prefetch = 0 : i64, scratch_operands = 0 : i64, tpu.core_type = #tpu.core_type<tc>, window_params = [{transform_indices = @transform_0, window_bounds = array<i64: 8, 784>}, {pipeline_mode = #tpu.pipeline_mode<synchronous>, transform_indices = @transform_1, window_bounds = array<i64: 128, 784>}, {pipeline_mode = #tpu.pipeline_mode<synchronous>, transform_indices = @transform_2, window_bounds = array<i64: 1, 128>}, {transform_indices = @transform_3, window_bounds = array<i64: 8, 128>}]} {
    %c0 = arith.constant 0 : index
    %c0_0 = arith.constant 0 : index
    %0 = vector.load %arg1[%c0, %c0_0] : memref<8x784xf32, #tpu.memory_space<vmem>>, vector<8x784xf32>
    %c0_1 = arith.constant 0 : index
    %c0_2 = arith.constant 0 : index
    %1 = vector.load %arg2[%c0_1, %c0_2] : memref<128x784xf32, #tpu.memory_space<vmem>>, vector<128x784xf32>
    %cst = arith.constant dense<0.000000e+00> : vector<8x128xf32>
    %2 = tpu.matmul %0, %1, %cst {dimension_numbers = #tpu.dot_dimension_numbers<[1], [1], [0], [0], [0, 0, 1, 0], [], []>} : vector<8x784xf32>, vector<128x784xf32>, vector<8x128xf32> -> vector<8x128xf32>
    %c0_3 = arith.constant 0 : index
    %c0_4 = arith.constant 0 : index
    %3 = vector.load %arg3[%c0_3, %c0_4] : memref<1x128xf32, #tpu.memory_space<vmem>>, vector<1x128xf32>
    %4 = vector.broadcast %3 : vector<1x128xf32> to vector<8x128xf32>
    %5 = arith.addf %2, %4 : vector<8x128xf32>
    %c0_5 = arith.constant 0 : index
    %c0_6 = arith.constant 0 : index
    %6 = vector.load %arg4[%c0_5, %c0_6] : memref<8x128xf32, #tpu.memory_space<vmem>>, vector<8x128xf32>
    tpu.vector_store %arg4[%c0_5, %c0_6], %5 {strides = array<i32>} : memref<8x128xf32, #tpu.memory_space<vmem>>, vector<8x128xf32>,
    return
  }
  func.func @transform_0(%arg0: i32) -> (i32, i32) {
    %c0_i32 = arith.constant 0 : i32
    %c0_i32_0 = arith.constant 0 : i32
    return %arg0, %c0_i32 : i32, i32
  }
  func.func @transform_1(%arg0: i32) -> (i32, i32) {
    %c0_i32 = arith.constant 0 : i32
    %c0_i32_0 = arith.constant 0 : i32
    %c0_i32_1 = arith.constant 0 : i32
    return %c0_i32, %c0_i32_0 : i32, i32
  }
  func.func @transform_2(%arg0: i32) -> (i32, i32) {
    %c0_i32 = arith.constant 0 : i32
    %c0_i32_0 = arith.constant 0 : i32
    %c0_i32_1 = arith.constant 0 : i32
    return %c0_i32, %c0_i32_0 : i32, i32
  }
  func.func @transform_3(%arg0: i32) -> (i32, i32) {
    %c0_i32 = arith.constant 0 : i32
    %c0_i32_0 = arith.constant 0 : i32
    return %arg0, %c0_i32 : i32, i32
  }
}

</mosaic_0001>

<bundles_post_ra>
// kernel: softmax_regression_forward.1
= control target key start
LH: loop header
LB: loop body
LE: loop exit
PB: predicated region body
PF: predicated region fallthrough
CT: control target
= control target key end

     0   :  { %s793_s0 = inlined_call_operand.vmem [shape: f32[8,784], index: 0, kind: input, shape index: {}]   ;;  %s794_s1 = inlined_call_operand.vmem [shape: f32[128,784], index: 1, kind: input, shape index: {}]   ;;  %s795_s2 = inlined_call_operand.vmem [shape: f32[1,128], index: 2, kind: input, shape index: {}]   ;;  %s796_s3 = inlined_call_operand.hbm [shape: f32[8,128], index: 3, kind: output, shape index: {}]  }
   0x1   :  { %v129_v0 = vld [vmem:[%s794_s1 + $0x358] sm:$0xff]  ;;  %v127_v1 = vld [vmem:[%s794_s1 + $0x348] sm:$0xff]  ;;  %v128_v2 = vld [vmem:[%s794_s1 + $0x350] sm:$0xff] }
   0x2   :  { %230 = vmatpush.xpose.msra.mxu2 %v129_v0  ;;  %190 = vmatpush.xpose.msra.mxu0 %v127_v1  ;;  %v122_v3 = vld [vmem:[%s794_s1 + $0x320] sm:$0xff]  ;;  %v120_v4 = vld [vmem:[%s794_s1 + $0x310] sm:$0xff]  ;;  %v121_v5 = vld [vmem:[%s794_s1 + $0x318] sm:$0xff] }
   0x3   :  { %210 = vmatpush.xpose.msra.mxu1 %v128_v2  ;;  %v115_v6 = vld [vmem:[%s794_s1 + $0x2e8] sm:$0xff]  ;;  %v113_v7 = vld [vmem:[%s794_s1 + $0x2d8] sm:$0xff]  ;;  %v114_v8 = vld [vmem:[%s794_s1 + $0x2e0] sm:$0xff] }
   0x4   :  { %v108_v9 = vld [vmem:[%s794_s1 + $0x2b0] sm:$0xff]  ;;  %v106_v10 = vld [vmem:[%s794_s1 + $0x2a0] sm:$0xff]  ;;  %v107_v11 = vld [vmem:[%s794_s1 + $0x2a8] sm:$0xff] }
   0x6   :  { %231 = vmatpush.xpose.msra.mxu2 %v122_v3  ;;  %191 = vmatpush.xpose.msra.mxu0 %v120_v4 }
   0x7   :  { %211 = vmatpush.xpose.msra.mxu1 %v121_v5 }
   0xa   :  { %232 = vmatpush.xpose.msra.mxu2 %v115_v6  ;;  %192 = vmatpush.xpose.msra.mxu0 %v113_v7 }
   0xb   :  { %212 = vmatpush.xpose.msra.mxu1 %v114_v8 }
   0xc   :  { %8 = vsyncpa [#allocation3], 0  ;;  %v101_v12 = vld [vmem:[%s794_s1 + $0x278] sm:$0xff]  ;;  %v99_v13 = vld [vmem:[%s794_s1 + $0x268] sm:$0xff]  ;;  %vm138_vm0 = vcmask 130048   ;;  %s338_s11 = sshll.u32 %s796_s3, 4  ;;  %s339_s11 = int_to_ptr.hbm [resolvable:$true] %s338_s11 }
   0xd   :  { %v100_v14 = vld [vmem:[%s794_s1 + $0x270] sm:$0xff]  ;;  %v94_v15 = vld [vmem:[%s794_s1 + $0x240] sm:$0xff]  ;;  %v93_v17 = vld [vmem:[%s794_s1 + $0x238] sm:$0xff] }
   0xe   :  { %233 = vmatpush.xpose.msra.mxu2 %v108_v9  ;;  %193 = vmatpush.xpose.msra.mxu0 %v106_v10  ;;  %v92_v16 = vld [vmem:[%s794_s1 + $0x230] sm:$0xff]  ;;  %v130_v18 = vld [vmem:[%s794_s1 + $0x360] sm:$0xff]  ;;  %v87_v19 = vld [vmem:[%s794_s1 + $0x208] sm:$0xff] }
   0xf   :  { %213 = vmatpush.xpose.msra.mxu1 %v107_v11  ;;  %v85_v20 = vld [vmem:[%s794_s1 + $0x1f8] sm:$0xff]  ;;  %250 = vmatpush.xpose.msra.mxu3 %v130_v18  ;;  %v86_v21 = vld [vmem:[%s794_s1 + $0x200] sm:$0xff]  ;;  %v123_v22 = vld [vmem:[%s794_s1 + $0x328] sm:$0xff] }
  0x10   :  { %v80_v23 = vld [vmem:[%s794_s1 + $0x1d0] sm:$0xff]  ;;  %v78_v24 = vld [vmem:[%s794_s1 + $0x1c0] sm:$0xff]  ;;  %v79_v25 = vld [vmem:[%s794_s1 + $0x1c8] sm:$0xff] }
  0x11   :  { %v73_v26 = vld [vmem:[%s794_s1 + $0x198] sm:$0xff]  ;;  %v71_v27 = vld [vmem:[%s794_s1 + $0x188] sm:$0xff]  ;;  %v116_v28 = vld [vmem:[%s794_s1 + $0x2f0] sm:$0xff] }
  0x12   :  { %234 = vmatpush.xpose.msra.mxu2 %v101_v12  ;;  %194 = vmatpush.xpose.msra.mxu0 %v99_v13  ;;  %v72_v29 = vld [vmem:[%s794_s1 + $0x190] sm:$0xff]  ;;  %v66_v30 = vld [vmem:[%s794_s1 + $0x160] sm:$0xff]  ;;  %v109_v32 = vld [vmem:[%s794_s1 + $0x2b8] sm:$0xff] }
  0x13   :  { %214 = vmatpush.xpose.msra.mxu1 %v100_v14  ;;  %251 = vmatpush.xpose.msra.mxu3 %v123_v22  ;;  %v64_v31 = vld [vmem:[%s794_s1 + $0x150] sm:$0xff]  ;;  %v65_v33 = vld [vmem:[%s794_s1 + $0x158] sm:$0xff]  ;;  %v59_v34 = vld [vmem:[%s794_s1 + $0x128] sm:$0xff] }
  0x14   :  { %v57_v35 = vld [vmem:[%s794_s1 + $0x118] sm:$0xff]  ;;  %v102_v36 = vld [vmem:[%s794_s1 + $0x280] sm:$0xff]  ;;  %v52_v38 = vld [vmem:[%s794_s1 + $0xf0] sm:$0xff] }
  0x15   :  { %v58_v37 = vld [vmem:[%s794_s1 + $0x120] sm:$0xff]  ;;  %v95_v40 = vld [vmem:[%s794_s1 + $0x248] sm:$0xff]  ;;  %v45_v42 = vld [vmem:[%s794_s1 + $0xb8] sm:$0xff] }
  0x16   :  { %235 = vmatpush.xpose.msra.mxu2 %v94_v15  ;;  %195 = vmatpush.xpose.msra.mxu0 %v92_v16  ;;  %v50_v39 = vld [vmem:[%s794_s1 + $0xe0] sm:$0xff]  ;;  %v51_v41 = vld [vmem:[%s794_s1 + $0xe8] sm:$0xff]  ;;  %v88_v44 = vld [vmem:[%s794_s1 + $0x210] sm:$0xff] }
  0x17   :  { %215 = vmatpush.xpose.msra.mxu1 %v93_v17  ;;  %252 = vmatpush.xpose.msra.mxu3 %v116_v28  ;;  %v43_v43 = vld [vmem:[%s794_s1 + $0xa8] sm:$0xff]  ;;  %v44_v45 = vld [vmem:[%s794_s1 + $0xb0] sm:$0xff]  ;;  %v38_v46 = vld [vmem:[%s794_s1 + $0x80] sm:$0xff] }
  0x18   :  { %v36_v47 = vld [vmem:[%s794_s1 + $0x70] sm:$0xff]  ;;  %v81_v48 = vld [vmem:[%s794_s1 + $0x1d8] sm:$0xff]  ;;  %v31_v50 = vld [vmem:[%s794_s1 + $0x48] sm:$0xff] }
  0x19   :  { %v37_v49 = vld [vmem:[%s794_s1 + $0x78] sm:$0xff]  ;;  %v74_v52 = vld [vmem:[%s794_s1 + $0x1a0] sm:$0xff]  ;;  %v24_v54 = vld [vmem:[%s794_s1 + $0x10] sm:$0xff] }
  0x1a   :  { %236 = vmatpush.xpose.msra.mxu2 %v87_v19  ;;  %196 = vmatpush.xpose.msra.mxu0 %v85_v20  ;;  %v29_v51 = vld [vmem:[%s794_s1 + $0x38] sm:$0xff]  ;;  %v30_v53 = vld [vmem:[%s794_s1 + $0x40] sm:$0xff]  ;;  %v67_v56 = vld [vmem:[%s794_s1 + $0x168] sm:$0xff] }
  0x1b   :  { %216 = vmatpush.xpose.msra.mxu1 %v86_v21  ;;  %253 = vmatpush.xpose.msra.mxu3 %v109_v32  ;;  %v22_v55 = vld [vmem:[%s794_s1] sm:$0xff]  ;;  %v133_v57 = vld [vmem:[%s794_s1 + $0x378] sm:$0xff]  ;;  %v131_v58 = vld [vmem:[%s794_s1 + $0x368] sm:$0xff] }
  0x1c   :  { %v23_v59 = vld [vmem:[%s794_s1 + $0x8] sm:$0xff]  ;;  %v132_v60 = vld [vmem:[%s794_s1 + $0x370] sm:$0xff]  ;;  %v126_v62 = vld [vmem:[%s794_s1 + $0x340] sm:$0xff] }
  0x1d   :  { %v60_v61 = vld [vmem:[%s794_s1 + $0x130] sm:$0xff]  ;;  %v125_v0 = vld [vmem:[%s794_s1 + $0x338] sm:$0xff]  ;;  %v119_v2 = vld [vmem:[%s794_s1 + $0x308] sm:$0xff] }
  0x1e   :  { %237 = vmatpush.xpose.msra.mxu2 %v80_v23  ;;  %197 = vmatpush.xpose.msra.mxu0 %v78_v24  ;;  %v124_v63 = vld [vmem:[%s794_s1 + $0x330] sm:$0xff]  ;;  %v53_v1 = vld [vmem:[%s794_s1 + $0xf8] sm:$0xff]  ;;  %v118_v4 = vld [vmem:[%s794_s1 + $0x300] sm:$0xff] }
  0x1f   :  { %217 = vmatpush.xpose.msra.mxu1 %v79_v25  ;;  %254 = vmatpush.xpose.msra.mxu3 %v102_v36  ;;  %v117_v3 = vld [vmem:[%s794_s1 + $0x2f8] sm:$0xff]  ;;  %v46_v5 = vld [vmem:[%s794_s1 + $0xc0] sm:$0xff]  ;;  %v112_v6 = vld [vmem:[%s794_s1 + $0x2d0] sm:$0xff] }
  0x20   :  { %v110_v7 = vld [vmem:[%s794_s1 + $0x2c0] sm:$0xff]  ;;  %v111_v8 = vld [vmem:[%s794_s1 + $0x2c8] sm:$0xff]  ;;  %v105_v10 = vld [vmem:[%s794_s1 + $0x298] sm:$0xff] }
  0x21   :  { %v39_v9 = vld [vmem:[%s794_s1 + $0x88] sm:$0xff]  ;;  %v104_v12 = vld [vmem:[%s794_s1 + $0x290] sm:$0xff]  ;;  %v98_v14 = vld [vmem:[%s794_s1 + $0x260] sm:$0xff] }
  0x22   :  { %238 = vmatpush.xpose.msra.mxu2 %v73_v26  ;;  %198 = vmatpush.xpose.msra.mxu0 %v71_v27  ;;  %v103_v11 = vld [vmem:[%s794_s1 + $0x288] sm:$0xff]  ;;  %v32_v13 = vld [vmem:[%s794_s1 + $0x50] sm:$0xff]  ;;  %v97_v16 = vld [vmem:[%s794_s1 + $0x258] sm:$0xff] }
  0x23   :  { %218 = vmatpush.xpose.msra.mxu1 %v72_v29  ;;  %255 = vmatpush.xpose.msra.mxu3 %v95_v40  ;;  %v96_v15 = vld [vmem:[%s794_s1 + $0x250] sm:$0xff]  ;;  %v25_v17 = vld [vmem:[%s794_s1 + $0x18] sm:$0xff]  ;;  %v91_v19 = vld [vmem:[%s794_s1 + $0x228] sm:$0xff] }
  0x24   :  { %v17_v18 = vld [vmem:[%s793_s0 + $0x10] sm:$0xff]  ;;  %v89_v20 = vld [vmem:[%s794_s1 + $0x218] sm:$0xff]  ;;  %v90_v21 = vld [vmem:[%s794_s1 + $0x220] sm:$0xff] }
  0x25   :  { %v15_v22 = vld [vmem:[%s793_s0] sm:$0xff]  ;;  %v18_v23 = vld [vmem:[%s793_s0 + $0x18] sm:$0xff]  ;;  %v84_v24 = vld [vmem:[%s794_s1 + $0x1f0] sm:$0xff] }
  0x26   :  { %239 = vmatpush.xpose.msra.mxu2 %v66_v30  ;;  %199 = vmatpush.xpose.msra.mxu0 %v64_v31  ;;  %v82_v25 = vld [vmem:[%s794_s1 + $0x1e0] sm:$0xff]  ;;  %v16_v26 = vld [vmem:[%s793_s0 + $0x8] sm:$0xff]  ;;  %v77_v28 = vld [vmem:[%s794_s1 + $0x1b8] sm:$0xff] }
  0x27   :  { %219 = vmatpush.xpose.msra.mxu1 %v65_v33  ;;  %256 = vmatpush.xpose.msra.mxu3 %v88_v44  ;;  %v83_v27 = vld [vmem:[%s794_s1 + $0x1e8] sm:$0xff]  ;;  %v76_v30 = vld [vmem:[%s794_s1 + $0x1b0] sm:$0xff]  ;;  %v70_v31 = vld [vmem:[%s794_s1 + $0x180] sm:$0xff] }
  0x28   :  { %v75_v29 = vld [vmem:[%s794_s1 + $0x1a8] sm:$0xff]  ;;  %v68_v32 = vld [vmem:[%s794_s1 + $0x170] sm:$0xff]  ;;  %v69_v33 = vld [vmem:[%s794_s1 + $0x178] sm:$0xff] }
  0x29   :  { %v62_v36 = vld [vmem:[%s794_s1 + $0x140] sm:$0xff]  ;;  %v49_v40 = vld [vmem:[%s794_s1 + $0xd8] sm:$0xff]  ;;  %v40_v44 = vld [vmem:[%s794_s1 + $0x90] sm:$0xff] }
  0x2a   :  { %240 = vmatpush.xpose.msra.mxu2 %v59_v34  ;;  %200 = vmatpush.xpose.msra.mxu0 %v57_v35  ;;  %v63_v34 = vld [vmem:[%s794_s1 + $0x148] sm:$0xff]  ;;  %v61_v35 = vld [vmem:[%s794_s1 + $0x138] sm:$0xff] }
  0x2b   :  { %220 = vmatpush.xpose.msra.mxu1 %v58_v37  ;;  %257 = vmatpush.xpose.msra.mxu3 %v81_v48  ;;  %v56_v37 = vld [vmem:[%s794_s1 + $0x110] sm:$0xff]  ;;  %v34_v48 = vld [vmem:[%s794_s1 + $0x60] sm:$0xff] }
  0x2e   :  { %241 = vmatpush.xpose.msra.mxu2 %v52_v38  ;;  %201 = vmatpush.xpose.msra.mxu0 %v50_v39  ;;  %v54_v38 = vld [vmem:[%s794_s1 + $0x100] sm:$0xff]  ;;  %v55_v39 = vld [vmem:[%s794_s1 + $0x108] sm:$0xff] }
  0x2f   :  { %221 = vmatpush.xpose.msra.mxu1 %v51_v41  ;;  %258 = vmatpush.xpose.msra.mxu3 %v74_v52  ;;  %v47_v41 = vld [vmem:[%s794_s1 + $0xc8] sm:$0xff]  ;;  %v21_v52 = vld [vmem:[%s793_s0 + $0x30] sm:$0xff] }
  0x32   :  { %242 = vmatpush.xpose.msra.mxu2 %v45_v42  ;;  %202 = vmatpush.xpose.msra.mxu0 %v43_v43  ;;  %v48_v42 = vld [vmem:[%s794_s1 + $0xd0] sm:$0xff]  ;;  %v42_v43 = vld [vmem:[%s794_s1 + $0xa0] sm:$0xff] }
  0x33   :  { %222 = vmatpush.xpose.msra.mxu1 %v44_v45  ;;  %259 = vmatpush.xpose.msra.mxu3 %v67_v56  ;;  %v41_v45 = vld [vmem:[%s794_s1 + $0x98] sm:$0xff] }
  0x36   :  { %243 = vmatpush.xpose.msra.mxu2 %v38_v46  ;;  %203 = vmatpush.xpose.msra.mxu0 %v36_v47  ;;  %v35_v46 = vld [vmem:[%s794_s1 + $0x68] sm:$0xff]  ;;  %v33_v47 = vld [vmem:[%s794_s1 + $0x58] sm:$0xff] }
  0x37   :  { %223 = vmatpush.xpose.msra.mxu1 %v37_v49  ;;  %260 = vmatpush.xpose.msra.mxu3 %v60_v61  ;;  %v28_v49 = vld [vmem:[%s794_s1 + $0x30] sm:$0xff] }
  0x3a   :  { %244 = vmatpush.xpose.msra.mxu2 %v31_v50  ;;  %204 = vmatpush.xpose.msra.mxu0 %v29_v51  ;;  %v26_v50 = vld [vmem:[%s794_s1 + $0x20] sm:$0xff]  ;;  %v27_v51 = vld [vmem:[%s794_s1 + $0x28] sm:$0xff] }
  0x3b   :  { %224 = vmatpush.xpose.msra.mxu1 %v30_v53  ;;  %261 = vmatpush.xpose.msra.mxu3 %v53_v1  ;;  %v19_v53 = vld [vmem:[%s793_s0 + $0x20] sm:$0xff] }
  0x3e   :  { %245 = vmatpush.xpose.msra.mxu2 %v24_v54  ;;  %205 = vmatpush.xpose.msra.mxu0 %v22_v55  ;;  %v20_v54 = vld [vmem:[%s793_s0 + $0x28] sm:$0xff]  ;;  %v365_v55 = vld [vmem:[%s795_s2] ss:$0 sm:$0xff]  ;;  %s392_s0 = smov [#allocation2]  }
  0x3f   :  { %225 = vmatpush.xpose.msra.mxu1 %v23_v59  ;;  %262 = vmatpush.xpose.msra.mxu3 %v46_v5  ;;  %s336_s8 = sshll.u32 %s392_s0, 4  ;;  %s337_s8 = int_to_ptr.vmem [resolvable:$true] %s336_s8 }
  0x41   :  { %246 = vmatmul.f32.vlgmr.msra.gmra.mxu2 %v17_v18  ;;  %206 = vmatmul.f32.vlgmr.msra.gmra.mxu0 %v15_v22 }
  0x42   :  { %347 = vmatpush.xpose.msk.msrb.mxu2 %vm138_vm0, %v133_v57  ;;  %270 = vmatpush.xpose.msrb.mxu0 %v131_v58 }
  0x43   :  { %290 = vmatpush.xpose.msrb.mxu1 %v132_v60  ;;  %263 = vmatpush.xpose.msra.mxu3 %v39_v9 }
  0x44   :  { %226 = vmatmul.f32.vlgmr.msra.gmra.mxu1 %v16_v26 }
  0x46   :  { %348 = vmatpush.xpose.msk.msrb.mxu2 %vm138_vm0, %v126_v62  ;;  %271 = vmatpush.xpose.msrb.mxu0 %v124_v63 }
  0x47   :  { %291 = vmatpush.xpose.msrb.mxu1 %v125_v0  ;;  %264 = vmatpush.xpose.msra.mxu3 %v32_v13 }
  0x4a   :  { %349 = vmatpush.xpose.msk.msrb.mxu2 %vm138_vm0, %v119_v2  ;;  %272 = vmatpush.xpose.msrb.mxu0 %v117_v3 }
  0x4b   :  { %292 = vmatpush.xpose.msrb.mxu1 %v118_v4  ;;  %265 = vmatpush.xpose.msra.mxu3 %v25_v17 }
  0x4e   :  { %350 = vmatpush.xpose.msk.msrb.mxu2 %vm138_vm0, %v112_v6  ;;  %273 = vmatpush.xpose.msrb.mxu0 %v110_v7 }
  0x4f   :  { %293 = vmatpush.xpose.msrb.mxu1 %v111_v8  ;;  %266 = vmatmul.f32.vlgmr.msra.gmra.mxu3 %v18_v23 }
  0x52   :  { %351 = vmatpush.xpose.msk.msrb.mxu2 %vm138_vm0, %v105_v10  ;;  %274 = vmatpush.xpose.msrb.mxu0 %v103_v11 }
  0x53   :  { %294 = vmatpush.xpose.msrb.mxu1 %v104_v12 }
  0x56   :  { %352 = vmatpush.xpose.msk.msrb.mxu2 %vm138_vm0, %v98_v14  ;;  %275 = vmatpush.xpose.msrb.mxu0 %v96_v15 }
  0x57   :  { %295 = vmatpush.xpose.msrb.mxu1 %v97_v16 }
  0x5a   :  { %353 = vmatpush.xpose.msk.msrb.mxu2 %vm138_vm0, %v91_v19  ;;  %276 = vmatpush.xpose.msrb.mxu0 %v89_v20 }
  0x5b   :  { %296 = vmatpush.xpose.msrb.mxu1 %v90_v21 }
  0x5e   :  { %354 = vmatpush.xpose.msk.msrb.mxu2 %vm138_vm0, %v84_v24  ;;  %277 = vmatpush.xpose.msrb.mxu0 %v82_v25 }
  0x5f   :  { %297 = vmatpush.xpose.msrb.mxu1 %v83_v27 }
  0x62   :  { %355 = vmatpush.xpose.msk.msrb.mxu2 %vm138_vm0, %v77_v28  ;;  %278 = vmatpush.xpose.msrb.mxu0 %v75_v29 }
  0x63   :  { %298 = vmatpush.xpose.msrb.mxu1 %v76_v30 }
  0x66   :  { %356 = vmatpush.xpose.msk.msrb.mxu2 %vm138_vm0, %v70_v31  ;;  %279 = vmatpush.xpose.msrb.mxu0 %v68_v32 }
  0x67   :  { %299 = vmatpush.xpose.msrb.mxu1 %v69_v33 }
  0x6a   :  { %357 = vmatpush.xpose.msk.msrb.mxu2 %vm138_vm0, %v63_v34  ;;  %280 = vmatpush.xpose.msrb.mxu0 %v61_v35 }
  0x6b   :  { %300 = vmatpush.xpose.msrb.mxu1 %v62_v36 }
  0x6e   :  { %358 = vmatpush.xpose.msk.msrb.mxu2 %vm138_vm0, %v56_v37  ;;  %281 = vmatpush.xpose.msrb.mxu0 %v54_v38 }
  0x6f   :  { %301 = vmatpush.xpose.msrb.mxu1 %v55_v39 }
  0x72   :  { %359 = vmatpush.xpose.msk.msrb.mxu2 %vm138_vm0, %v49_v40  ;;  %282 = vmatpush.xpose.msrb.mxu0 %v47_v41 }
  0x73   :  { %302 = vmatpush.xpose.msrb.mxu1 %v48_v42 }
  0x76   :  { %360 = vmatpush.xpose.msk.msrb.mxu2 %vm138_vm0, %v42_v43  ;;  %283 = vmatpush.xpose.msrb.mxu0 %v40_v44 }
  0x77   :  { %303 = vmatpush.xpose.msrb.mxu1 %v41_v45 }
  0x7a   :  { %361 = vmatpush.xpose.msk.msrb.mxu2 %vm138_vm0, %v35_v46  ;;  %284 = vmatpush.xpose.msrb.mxu0 %v33_v47 }
  0x7b   :  { %304 = vmatpush.xpose.msrb.mxu1 %v34_v48 }
  0x7e   :  { %362 = vmatpush.xpose.msk.msrb.mxu2 %vm138_vm0, %v28_v49  ;;  %285 = vmatpush.xpose.msrb.mxu0 %v26_v50 }
  0x7f   :  { %305 = vmatpush.xpose.msrb.mxu1 %v27_v51 }
  0x81   :  { %363 = vmatmul.msk.f32.vlgmr.msrb.gmra.mxu2 %vm138_vm0, %v21_v52  ;;  %286 = vmatmul.f32.vlgmr.msrb.gmra.mxu0 %v19_v53 }
  0x82   :  { %306 = vmatmul.f32.vlgmr.msrb.gmra.mxu1 %v20_v54 }
  0xbe   :  { %v207_v56 = vpop.f32.mrf.mxu0 }
  0xbf   :  { %v208_v57 = vadd.f32 %v365_v55, %v207_v56 }
  0xc1   :  { %v227_v58 = vpop.f32.mrf.mxu1 }
  0xc2   :  { %v228_v59 = vadd.f32 %v227_v58, %v208_v57 }
  0xc4   :  { %v247_v60 = vpop.f32.mrf.mxu2 }
  0xc5   :  { %v248_v61 = vadd.f32 %v247_v60, %v228_v59 }
  0xd2   :  { %v267_v62 = vpop.f32.mrf.mxu3 }
  0xd3   :  { %v268_v63 = vadd.f32 %v267_v62, %v248_v61 }
  0xfe   :  { %v287_v0 = vpop.f32.mrf.mxu0 }
  0xff   :  { %v288_v1 = vadd.f32 %v287_v0, %v268_v63  ;;  %v307_v2 = vpop.f32.mrf.mxu1 }
 0x101   :  { %v308_v3 = vadd.f32 %v307_v2, %v288_v1 }
 0x104   :  { %v327_v4 = vpop.f32.mrf.mxu2 }
 0x105   :  { %v328_v5 = vadd.f32 %v327_v4, %v308_v3 }
 0x107   :  { %330 = vst [vmem:[#allocation2] sm:$0xff] %v328_v5 }
 0x108   :  { %341 = dma.vmem_to_hbm [thread:$0]  %s337_s8, 128, %s339_s11, [#allocation3]  }
 0x109   :  { %390 = dma.done.wait [#allocation3], 128  }
 0x10a   :  { %391 = vsyncadd [#allocation3], 4294967168 }
 0x10b   :  { %346 = vsyncpa [#allocation3], 1 }

</bundles_post_ra>
